<compile_context>
chip_gen: v5e
topology: v5e:2x2
jax: 0.10.0
libtpu: 0.0.40
codegen_flags: <defaults>
</compile_context>

<pallas_src>
import functools

import jax
import jax.numpy as jnp
from jax.experimental import pallas as pl
from jax.experimental.pallas import tpu as pltpu


def _round_up(n: int, m: int) -> int:
    return ((n + m - 1) // m) * m


# --------------------------------------------------------------------------
# Kernel: fused MLP over one (TM, d_in) row tile.
# refs = (x_ref, w0, b0, w1, b1, ..., w_{L-1}, b_{L-1}, o_ref)
# Weights are (in, out_pad) in the compute dtype, biases are (1, out_pad) f32,
# accumulation / bias add / ReLU are f32.
# --------------------------------------------------------------------------
def _mlp_kernel(*refs, num_layers: int):
    x_ref = refs[0]
    o_ref = refs[-1]
    layer_refs = refs[1:-1]

    h = x_ref[...]                                   # (TM, d_in) compute dtype
    for i in range(num_layers):
        w = layer_refs[2 * i][...]                   # (in, out_pad) compute dtype
        b = layer_refs[2 * i + 1][...]               # (1, out_pad) f32
        y = jnp.dot(h, w, preferred_element_type=jnp.float32) + b
        if i < num_layers - 1:
            y = jnp.maximum(y, 0.0)                  # ReLU in f32 (v5e-friendly)
            h = y.astype(w.dtype)                    # back to compute dtype for MXU
        else:
            h = y
    o_ref[...] = h.astype(o_ref.dtype)


# --------------------------------------------------------------------------
# One-time parameter preparation (cached at construction time).
#   * layer 0 input dim stays unpadded (matches x's real feature dim)
#   * hidden dims padded to 128 lanes (exact zero padding)
#   * last layer's output dim stays unpadded (lets us write (N, d_out) directly)
# --------------------------------------------------------------------------
def pad_mlp_params(params, compute_dtype):
    num_layers = len(params)
    padded = []
    for i, (w_t, b) in enumerate(params):
        di, do = w_t.shape
        di_p = di if i == 0 else _round_up(di, 128)
        do_p = do if i == num_layers - 1 else _round_up(do, 128)
        w_p = jnp.zeros((di_p, do_p), compute_dtype)
        w_p = w_p.at[:di, :do].set(w_t.astype(compute_dtype))
        b_p = jnp.zeros((1, do_p), jnp.float32)
        b_p = b_p.at[0, :do].set(b.astype(jnp.float32))
        padded.append((w_p, b_p))
    return padded


def mlp_pallas(x, padded_params, *, compute_dtype=jnp.bfloat16, block_rows=1024):
    """x: (..., d_in). padded_params: cached output of pad_mlp_params."""
    lead_shape = x.shape[:-1]
    d_in = x.shape[-1]
    out_dtype = x.dtype
    num_layers = len(padded_params)
    d_out = padded_params[-1][0].shape[1]            # last layer is unpadded

    assert padded_params[0][0].shape[0] == d_in, "x feature dim mismatch"

    # Cast x to the MXU operand dtype (halves x HBM bytes when bf16); no other
    # host-side copies: no feature padding, no row padding, no output slice.
    x2 = x.reshape(-1, d_in)
    if x2.dtype != compute_dtype:
        x2 = x2.astype(compute_dtype)
    n = x2.shape[0]

    # Row tiling: multiple of 8, clamped so the "parallel" grid has >= 2 steps
    # whenever possible (keeps both v7x TensorCores busy; no-op on v5e/v6e).
    block_rows = max(8, _round_up(block_rows, 8))
    tm = min(block_rows, max(8, _round_up(pl.cdiv(n, 2), 8)))
    grid = (pl.cdiv(n, tm),)                         # last block may be partial

    in_specs = [pl.BlockSpec((tm, d_in), lambda i: (i, 0))]
    flat_inputs = [x2]
    for (w_p, b_p) in padded_params:
        # Whole-array blocks, constant index map -> VMEM-resident across grid.
        in_specs.append(pl.BlockSpec(w_p.shape, lambda i: (0, 0)))
        in_specs.append(pl.BlockSpec(b_p.shape, lambda i: (0, 0)))
        flat_inputs.append(w_p)
        flat_inputs.append(b_p)
    out_spec = pl.BlockSpec((tm, d_out), lambda i: (i, 0))

    # --- VMEM footprint (asserted, not silently clamped) -------------------
    cbytes = jnp.dtype(compute_dtype).itemsize
    obytes = jnp.dtype(out_dtype).itemsize
    need = 2 * tm * d_in * cbytes                    # double-buffered x tile
    need += 2 * tm * d_out * obytes                  # double-buffered out tile
    for (w_p, b_p) in padded_params:
        need += 2 * (w_p.size * cbytes + b_p.size * 4)   # resident params
        need += tm * w_p.shape[1] * 4                    # f32 intermediate act
    VMEM_CEILING = 28 << 20   # inside v7x 32 MiB scoped default / 64 MiB phys
    assert need <= VMEM_CEILING, (
        f"MLP VMEM footprint {need} B exceeds ceiling {VMEM_CEILING} B; "
        "reduce block_rows or hidden_dim")
    vmem_limit = int(min(max(2 * need, 16 << 20), VMEM_CEILING))

    kernel = functools.partial(_mlp_kernel, num_layers=num_layers)
    out = pl.pallas_call(
        kernel,
        out_shape=jax.ShapeDtypeStruct((n, d_out), out_dtype),
        grid=grid,
        in_specs=in_specs,
        out_specs=out_spec,
        compiler_params=pltpu.CompilerParams(
            dimension_semantics=("parallel",),
            vmem_limit_bytes=vmem_limit,
        ),
    )(*flat_inputs)

    return out.reshape(*lead_shape, d_out)


class MLP:
    """JAX/Pallas port of DETR's simple MLP (fused single-kernel forward)."""

    def __init__(self, input_dim, hidden_dim, output_dim, num_layers, key,
                 compute_dtype=jnp.bfloat16):
        self.num_layers = num_layers
        self.compute_dtype = compute_dtype
        h = [hidden_dim] * (num_layers - 1)
        dims_in = [input_dim] + h
        dims_out = h + [output_dim]
        self.params = []
        for n_in, n_out in zip(dims_in, dims_out):
            key, kw, kb = jax.random.split(key, 3)
            bound = 1.0 / jnp.sqrt(jnp.float32(n_in))
            # PyTorch nn.Linear stores weight as (out, in); keep it transposed.
            w_t = jax.random.uniform(
                kw, (n_in, n_out), jnp.float32, minval=-bound, maxval=bound)
            b = jax.random.uniform(
                kb, (n_out,), jnp.float32, minval=-bound, maxval=bound)
            self.params.append((w_t, b))
        # Pad + cast once; reused on every forward (no per-call XLA pad ops).
        self.padded_params = pad_mlp_params(self.params, compute_dtype)

    def __call__(self, x, *, block_rows=1024):
        return mlp_pallas(x, self.padded_params,
                          compute_dtype=self.compute_dtype,
                          block_rows=block_rows)


def reference_forward(x, params, num_layers):
    x2 = x.reshape(-1, x.shape[-1])
    for i, (w_t, b) in enumerate(params):
        x2 = x2 @ w_t + b
        if i < num_layers - 1:
            x2 = jnp.maximum(x2, 0.0)
    return x2.reshape(*x.shape[:-1], x2.shape[-1])


if __name__ == "__main__":
    key = jax.random.PRNGKey(0)
    k_x, k_x2, k_x3, k_p = jax.random.split(key, 4)

    # DETR bbox-head style shapes: 3 layers, hidden 32, out 4.
    B, S = 2, 8
    input_dim, hidden_dim, output_dim, num_layers = 32, 32, 4, 3

    x = jax.random.normal(k_x, (B, S, input_dim), jnp.float32)

    # 1) f32 compute path: exact semantics of the PyTorch module.
    mlp_f32 = MLP(input_dim, hidden_dim, output_dim, num_layers, k_p,
                  compute_dtype=jnp.float32)
    out = jax.block_until_ready(mlp_f32(x))
    ref = reference_forward(x, mlp_f32.params, num_layers)
    assert out.shape == (B, S, output_dim), out.shape
    assert jnp.allclose(out, ref, atol=1e-5, rtol=1e-5), "f32 mismatch vs reference"

    # 2) Default bf16 MXU operands (f32 accumulation / bias / ReLU): looser tol.
    mlp_bf16 = MLP(input_dim, hidden_dim, output_dim, num_layers, k_p,
                   compute_dtype=jnp.bfloat16)
    out_bf16 = jax.block_until_ready(mlp_bf16(x))
    assert jnp.allclose(out_bf16, ref, atol=3e-2, rtol=3e-2), "bf16 mismatch"

    # 3) Multi-block "parallel" row grid with a partial last tile:
    #    N = 200, block_rows = 64 -> tm = 64, grid = (4,), last block 8 valid rows.
    x_big = jax.random.normal(k_x2, (2, 100, input_dim), jnp.float32)
    out_big = jax.block_until_ready(mlp_f32(x_big, block_rows=64))
    ref_big = reference_forward(x_big, mlp_f32.params, num_layers)
    assert out_big.shape == (2, 100, output_dim), out_big.shape
    assert jnp.allclose(out_big, ref_big, atol=1e-5, rtol=1e-5), "tiled mismatch"

    # 4) Tiny N not a multiple of 8 (single partial block, no row padding copies).
    x_small = jax.random.normal(k_x3, (1, 5, input_dim), jnp.float32)
    out_small = jax.block_until_ready(mlp_f32(x_small))
    ref_small = reference_forward(x_small, mlp_f32.params, num_layers)
    assert out_small.shape == (1, 5, output_dim), out_small.shape
    assert jnp.allclose(out_small, ref_small, atol=1e-5, rtol=1e-5), "partial mismatch"

    print("KERNEL_OK")
</pallas_src>

<mosaic_0001>
module attributes {stable_mosaic.version = 11 : i64} {
  func.func @_mlp_kernel(%arg0: i32, %arg1: memref<8x32xf32, #tpu.memory_space<vmem>>, %arg2: memref<32x128xf32, #tpu.memory_space<vmem>>, %arg3: memref<1x128xf32, #tpu.memory_space<vmem>>, %arg4: memref<128x128xf32, #tpu.memory_space<vmem>>, %arg5: memref<1x128xf32, #tpu.memory_space<vmem>>, %arg6: memref<128x4xf32, #tpu.memory_space<vmem>>, %arg7: memref<1x4xf32, #tpu.memory_space<vmem>>, %arg8: memref<8x4xf32, #tpu.memory_space<vmem>>) attributes {dimension_semantics = [#tpu.dimension_semantics<parallel>], iteration_bounds = array<i64: 2>, scalar_prefetch = 0 : i64, scratch_operands = 0 : i64, tpu.core_type = #tpu.core_type<tc>, window_params = [{transform_indices = @transform_0, window_bounds = array<i64: 8, 32>}, {pipeline_mode = #tpu.pipeline_mode<synchronous>, transform_indices = @transform_1, window_bounds = array<i64: 32, 128>}, {pipeline_mode = #tpu.pipeline_mode<synchronous>, transform_indices = @transform_2, window_bounds = array<i64: 1, 128>}, {pipeline_mode = #tpu.pipeline_mode<synchronous>, transform_indices = @transform_3, window_bounds = array<i64: 128, 128>}, {pipeline_mode = #tpu.pipeline_mode<synchronous>, transform_indices = @transform_4, window_bounds = array<i64: 1, 128>}, {pipeline_mode = #tpu.pipeline_mode<synchronous>, transform_indices = @transform_5, window_bounds = array<i64: 128, 4>}, {pipeline_mode = #tpu.pipeline_mode<synchronous>, transform_indices = @transform_6, window_bounds = array<i64: 1, 4>}, {transform_indices = @transform_7, window_bounds = array<i64: 8, 4>}]} {
    %c0 = arith.constant 0 : index
    %c0_0 = arith.constant 0 : index
    %0 = vector.load %arg1[%c0, %c0_0] : memref<8x32xf32, #tpu.memory_space<vmem>>, vector<8x32xf32>
    %c0_1 = arith.constant 0 : index
    %c0_2 = arith.constant 0 : index
    %1 = vector.load %arg2[%c0_1, %c0_2] : memref<32x128xf32, #tpu.memory_space<vmem>>, vector<32x128xf32>
    %c0_3 = arith.constant 0 : index
    %c0_4 = arith.constant 0 : index
    %2 = vector.load %arg3[%c0_3, %c0_4] : memref<1x128xf32, #tpu.memory_space<vmem>>, vector<1x128xf32>
    %cst = arith.constant dense<0.000000e+00> : vector<8x128xf32>
    %3 = tpu.matmul %0, %1, %cst {dimension_numbers = #tpu.dot_dimension_numbers<[1], [0], [0], [1], [0, 0, 1, 1], [], []>} : vector<8x32xf32>, vector<32x128xf32>, vector<8x128xf32> -> vector<8x128xf32>
    %4 = vector.broadcast %2 : vector<1x128xf32> to vector<8x128xf32>
    %5 = arith.addf %3, %4 : vector<8x128xf32>
    %cst_5 = arith.constant 0.000000e+00 : f32
    %6 = vector.broadcast %cst_5 : f32 to vector<8x128xf32>
    %7 = arith.maximumf %5, %6 : vector<8x128xf32>
    %c0_6 = arith.constant 0 : index
    %c0_7 = arith.constant 0 : index
    %8 = vector.load %arg4[%c0_6, %c0_7] : memref<128x128xf32, #tpu.memory_space<vmem>>, vector<128x128xf32>
    %c0_8 = arith.constant 0 : index
    %c0_9 = arith.constant 0 : index
    %9 = vector.load %arg5[%c0_8, %c0_9] : memref<1x128xf32, #tpu.memory_space<vmem>>, vector<1x128xf32>
    %cst_10 = arith.constant dense<0.000000e+00> : vector<8x128xf32>
    %10 = tpu.matmul %7, %8, %cst_10 {dimension_numbers = #tpu.dot_dimension_numbers<[1], [0], [0], [1], [0, 0, 1, 1], [], []>} : vector<8x128xf32>, vector<128x128xf32>, vector<8x128xf32> -> vector<8x128xf32>
    %11 = vector.broadcast %9 : vector<1x128xf32> to vector<8x128xf32>
    %12 = arith.addf %10, %11 : vector<8x128xf32>
    %cst_11 = arith.constant 0.000000e+00 : f32
    %13 = vector.broadcast %cst_11 : f32 to vector<8x128xf32>
    %14 = arith.maximumf %12, %13 : vector<8x128xf32>
    %c0_12 = arith.constant 0 : index
    %c0_13 = arith.constant 0 : index
    %15 = vector.load %arg6[%c0_12, %c0_13] : memref<128x4xf32, #tpu.memory_space<vmem>>, vector<128x4xf32>
    %c0_14 = arith.constant 0 : index
    %c0_15 = arith.constant 0 : index
    %16 = vector.load %arg7[%c0_14, %c0_15] : memref<1x4xf32, #tpu.memory_space<vmem>>, vector<1x4xf32>
    %cst_16 = arith.constant dense<0.000000e+00> : vector<8x4xf32>
    %17 = tpu.matmul %14, %15, %cst_16 {dimension_numbers = #tpu.dot_dimension_numbers<[1], [0], [0], [1], [0, 0, 1, 1], [], []>} : vector<8x128xf32>, vector<128x4xf32>, vector<8x4xf32> -> vector<8x4xf32>
    %18 = vector.broadcast %16 : vector<1x4xf32> to vector<8x4xf32>
    %19 = arith.addf %17, %18 : vector<8x4xf32>
    %c0_17 = arith.constant 0 : index
    %c0_18 = arith.constant 0 : index
    %20 = vector.load %arg8[%c0_17, %c0_18] : memref<8x4xf32, #tpu.memory_space<vmem>>, vector<8x4xf32>
    tpu.vector_store %arg8[%c0_17, %c0_18], %19 {strides = array<i32>} : memref<8x4xf32, #tpu.memory_space<vmem>>, vector<8x4xf32>,
    return
  }
  func.func @transform_0(%arg0: i32) -> (i32, i32) {
    %c0_i32 = arith.constant 0 : i32
    %c0_i32_0 = arith.constant 0 : i32
    return %arg0, %c0_i32 : i32, i32
  }
  func.func @transform_1(%arg0: i32) -> (i32, i32) {
    %c0_i32 = arith.constant 0 : i32
    %c0_i32_0 = arith.constant 0 : i32
    %c0_i32_1 = arith.constant 0 : i32
    return %c0_i32, %c0_i32_0 : i32, i32
  }
  func.func @transform_2(%arg0: i32) -> (i32, i32) {
    %c0_i32 = arith.constant 0 : i32
    %c0_i32_0 = arith.constant 0 : i32
    %c0_i32_1 = arith.constant 0 : i32
    return %c0_i32, %c0_i32_0 : i32, i32
  }
  func.func @transform_3(%arg0: i32) -> (i32, i32) {
    %c0_i32 = arith.constant 0 : i32
    %c0_i32_0 = arith.constant 0 : i32
    %c0_i32_1 = arith.constant 0 : i32
    return %c0_i32, %c0_i32_0 : i32, i32
  }
  func.func @transform_4(%arg0: i32) -> (i32, i32) {
    %c0_i32 = arith.constant 0 : i32
    %c0_i32_0 = arith.constant 0 : i32
    %c0_i32_1 = arith.constant 0 : i32
    return %c0_i32, %c0_i32_0 : i32, i32
  }
  func.func @transform_5(%arg0: i32) -> (i32, i32) {
    %c0_i32 = arith.constant 0 : i32
    %c0_i32_0 = arith.constant 0 : i32
    %c0_i32_1 = arith.constant 0 : i32
    return %c0_i32, %c0_i32_0 : i32, i32
  }
  func.func @transform_6(%arg0: i32) -> (i32, i32) {
    %c0_i32 = arith.constant 0 : i32
    %c0_i32_0 = arith.constant 0 : i32
    %c0_i32_1 = arith.constant 0 : i32
    return %c0_i32, %c0_i32_0 : i32, i32
  }
  func.func @transform_7(%arg0: i32) -> (i32, i32) {
    %c0_i32 = arith.constant 0 : i32
    %c0_i32_0 = arith.constant 0 : i32
    return %arg0, %c0_i32 : i32, i32
  }
}

</mosaic_0001>

<bundles_post_ra>
// kernel: tpu_custom_call.1
= control target key start
LH: loop header
LB: loop body
LE: loop exit
PB: predicated region body
PF: predicated region fallthrough
CT: control target
= control target key end

     0   :  { %12 = vsyncpa [#allocation3], 0  ;;  %s924_s0 = inlined_call_operand.hbm [shape: f32[16,32], index: 0, kind: input, shape index: {}]   ;;  %s925_s1 = inlined_call_operand.hbm [shape: f32[32,128], index: 1, kind: input, shape index: {}]   ;;  %s926_s2 = inlined_call_operand.vmem [shape: f32[1,128], index: 2, kind: input, shape index: {}]   ;;  %s927_s3 = inlined_call_operand.vmem [shape: f32[128,128], index: 3, kind: input, shape index: {}]   ;;  %s928_s4 = inlined_call_operand.vmem [shape: f32[1,128], index: 4, kind: input, shape index: {}]   ;;  %s929_s5 = inlined_call_operand.vmem [shape: f32[128,4], index: 5, kind: input, shape index: {}]   ;;  %s930_s6 = inlined_call_operand.vmem [shape: f32[1,4], index: 6, kind: input, shape index: {}]   ;;  %s931_s7 = inlined_call_operand.vmem [shape: f32[16,4], index: 7, kind: output, shape index: {}]  }
   0x1   :  { %14 = vsyncpa [#allocation3 + $0x1], 0 }
   0x2   :  { %15 = vsyncpa [#allocation5], 0  ;;  %s716_s24 = smov 0   ;;  %s718_s25 = smov 0  }
   0x3   :  { %s720_s26 = smov 0   ;;  %s722_s27 = smov 0  }
   0x4 LB: > { %s215_s30 = sshll.u32 %s925_s1, 4  ;;  %s738_s8 = sadd.s32 4294967295, %s671_s27   ;;  %s671_s27 = sphi %s722_s27, %s938_s27   ;;  %s667_s26 = sphi %s720_s26, %s937_s26   ;;  %s663_s25 = sphi %s718_s25, %s936_s25   ;;  %s659_s24 = sphi %s716_s24, %s935_s24   ;;  %s216_s30 = int_to_ptr.hbm [resolvable:$true] %s215_s30 }
   0x5   : > { %p506_p0 = scmp.ge.s32.totalorder %s671_s27, 1  ;;  %p42_p1 = scmp.eq.s32.totalorder %s738_s8, 0 }
   0x6   : > { %p204_p2 = scmp.lt.s32.totalorder %s671_s27, 3  ;;  %s673_s10 = smov [#allocation4]  }
   0x7   : > { %s217_s11 = sshll.u32 %s673_s10, 4  ;;  %s674_s12 = smov 128   ;;  %s218_s11 = int_to_ptr.vmem [resolvable:$true] %s217_s11 }
   0x8   : > { %p743_p3 = pnand %p506_p0, %p204_p2  ;;  %s675_s13 = smov 8  }
   0x9   : > { %s752_s14 = sadd.s32 1, %s671_s27   ;;  %s28_s16 = sadd.s32 1, %s667_s26 }
   0xa   : > { %p524_p4 = pneg %p743_p3  ;;  %s25_s15 = ssub.s32 %s671_s27, %s752_s14 }
   0xb   : > { %p26_p6 = scmp.eq.s32.totalorder %s25_s15, 0  ;;  %p35_p7 = scmp.ne.s32.totalorder %s667_s26, %s663_s25 }
   0xc   : > { %p525_p5 = pnand %p524_p4, %p42_p1  ;;  %p36_p8 = scmp.eq.s32.totalorder %s671_s27, 0 }
   0xd   : > { %p41_p9 = scmp.ne.s32.totalorder %s663_s25, %s659_s24  ;;  %p533_p12 = scmp.lt.s32.totalorder %s671_s27, 2 }
   0xe   : > { %527 = dma.hbm_to_vmem [thread:$0]  (!%p525_p5), %s216_s30, 512, %s218_s11, [#allocation5], %s674_s12, %s674_s12, %s675_s13  }
   0xf   : > { %s762_s17 = scalar_select %p26_p6, %s667_s26, %s28_s16  }
  0x10   : > { %p37_p10 = por %p36_p8, %p35_p7  ;;  %p766_p11 = por %p42_p1, %p41_p9 }
  0x11   : > { %s246_s19 = sand.u32 1, %s667_s26   ;;  %s510_s21 = sshll.u32 %s671_s27, 3 }
  0x12   : > { %s509_s20 = sshll.u32 %s246_s19, 3  ;;  %s254_s28 = scalar_lea.hbm %s924_s0, %s510_s21 }
  0x13   : > { %s250_s29 = scalar_lea.vmem [#allocation2], %s509_s20  ;;  %s256_s10 = sshll.u32 %s254_s28, 4  ;;  %s257_s10 = int_to_ptr.hbm [resolvable:$true] %s256_s10 }
  0x14   : > { %s258_s30 = sshll.u32 %s250_s29, 4  ;;  %p776_p13 = pnand %p533_p12, %p37_p10  ;;  %s259_s30 = int_to_ptr.vmem [resolvable:$true] %s258_s30 }
  0x15   : > { %s247_s11 = scalar_lea.sflag [#allocation3], %s246_s19  ;;  %s603_s12 = sshra.s32 %s257_s10, 4  ;;  %s604_s12 = int_to_ptr.hbm [resolvable:$true] %s603_s12 }
  0x16   : > { %s605_s13 = scalar_lea.hbm %s604_s12, 8  ;;  %p607_p2 = pneg %p776_p13 }
  0x17   : > { %p606_p0 = scmp.ne.s32.totalorder %s604_s12, %s605_s13  ;;  %s610_s16 = scalar_lea.hbm %s924_s0, 16 }
  0x18   : > { %p611_p6 = scmp.lt.s32.totalorder %s604_s12, %s924_s0  ;;  %p612_p7 = scmp.lt.s32.totalorder %s610_s16, %s605_s13 }
  0x19   : > { %p608_p4 = pnand %p607_p2, %p606_p0 }
  0x1a   : > { %p613_p8 = por %p612_p7, %p611_p6 }
  0x1b   : > { %p609_p5 = pneg %p608_p4 }
  0x1d   : > { %p614_p9 = pnand %p613_p8, %p609_p5 }
  0x1f   : > { %617 = shalt.err (!%p614_p9)
}
  0x20   : > { %531 = dma.hbm_to_vmem [thread:$0]  (!%p776_p13), %s257_s10, 128, %s259_s30, %s247_s11  }
  0x21   : > { %267 = sbr.rel (%p743_p3) target bundleno = 444 (0x1bc), region = 48  ;;  %s269_s19 = sand.u32 (!%p743_p3), 1, %s663_s25  }
  0x22   : > { %s512_s22 = sshll.u32 (!%p743_p3), %s269_s19, 3  ;;  %s270_s23 = scalar_lea.sflag (!%p743_p3), [#allocation3], %s269_s19 }
  0x23   : > { %s273_s28 = scalar_lea.vmem (!%p743_p3), [#allocation2], %s512_s22 }
  0x26   : > { %650 = dma.done.wait (%p766_p11), %s270_s23, 128  }
  0x27   : > { %652 = vsyncadd (%p766_p11), %s270_s23, 4294967168 }
  0x28   : > { %654 = dma.done.wait (%p42_p1), [#allocation5], 512  }
  0x29   : > { %656 = vsyncadd (%p42_p1), [#allocation5], 4294966784  ;;  %v317_v0 = vld [vmem:[#allocation4 + $0x18] sm:$0xff]  ;;  %v316_v1 = vld [vmem:[#allocation4 + $0x10] sm:$0xff]  ;;  %vm322_vm0 = vcmask 261120   ;;  %p309_p1 = scmp.lt.s32.totalorder %s738_s8, 1 }
  0x2a   : > { %338 = vmatpush.msra.mxu0 %v317_v0  ;;  %v362_v2 = vld [vmem:[%s927_s3 + $0x78] sm:$0xff]  ;;  %v361_v4 = vld [vmem:[%s927_s3 + $0x70] sm:$0xff]  ;;  %v360_v5 = vld [vmem:[%s927_s3 + $0x68] sm:$0xff]  ;;  %vm428_vm1 = vcmask 31744  }
  0x2b   : > { %v315_v3 = vld [vmem:[#allocation4 + $0x8] sm:$0xff]  ;;  %367 = vmatpush.msra.mxu1 %v362_v2  ;;  %v314_v6 = vld [vmem:[#allocation4] sm:$0xff]  ;;  %v313_v7 = vld [vmem:[%s273_s28] sm:$0xff]  ;;  %s940_s8 = smov (!%p309_p1, %s738_s8), 1 }
  0x2c   : > { %339 = vmatpush.msra.mxu0 %v316_v1  ;;  %v359_v8 = vld [vmem:[%s927_s3 + $0x60] sm:$0xff]  ;;  %v358_v9 = vld [vmem:[%s927_s3 + $0x58] sm:$0xff]  ;;  %v357_v10 = vld [vmem:[%s927_s3 + $0x50] sm:$0xff]  ;;  %s514_s19 = sshll.u32 %s940_s8, 3 }
  0x2d   : > { %368 = vmatpush.msra.mxu1 %v361_v4  ;;  %v356_v11 = vld [vmem:[%s927_s3 + $0x48] sm:$0xff]  ;;  %v355_v12 = vld [vmem:[%s927_s3 + $0x40] sm:$0xff]  ;;  %v354_v13 = vld [vmem:[%s927_s3 + $0x38] sm:$0xff]  ;;  %s312_s29 = scalar_lea.vmem %s931_s7, %s514_s19 }
  0x2e   : > { %340 = vmatpush.msra.mxu0 %v315_v3  ;;  %v353_v14 = vld [vmem:[%s927_s3 + $0x30] sm:$0xff]  ;;  %v352_v15 = vld [vmem:[%s927_s3 + $0x28] sm:$0xff]  ;;  %v351_v16 = vld [vmem:[%s927_s3 + $0x20] sm:$0xff] }
  0x2f   : > { %369 = vmatpush.msra.mxu1 %v360_v5  ;;  %v350_v17 = vld [vmem:[%s927_s3 + $0x18] sm:$0xff]  ;;  %v349_v18 = vld [vmem:[%s927_s3 + $0x10] sm:$0xff]  ;;  %v348_v19 = vld [vmem:[%s927_s3 + $0x8] sm:$0xff] }
  0x30   : > { %341 = vmatpush.msra.mxu0 %v314_v6  ;;  %v347_v20 = vld [vmem:[%s927_s3] sm:$0xff]  ;;  %v403_v21 = vld [vmem:[%s929_s5 + $0x78] sm:$0xff]  ;;  %v402_v22 = vld [vmem:[%s929_s5 + $0x70] sm:$0xff] }
  0x31   : > { %515 = vmatmul.msk.f32.vlgmr.msra.gmra.mxu0 %vm322_vm0, %v313_v7  ;;  %370 = vmatpush.msra.mxu1 %v359_v8  ;;  %v401_v23 = vld [vmem:[%s929_s5 + $0x68] sm:$0xff]  ;;  %v400_v24 = vld [vmem:[%s929_s5 + $0x60] sm:$0xff]  ;;  %v399_v25 = vld [vmem:[%s929_s5 + $0x58] sm:$0xff] }
  0x32   : > { %408 = vmatpush.msra.mxu2 %v403_v21  ;;  %v398_v26 = vld [vmem:[%s929_s5 + $0x50] sm:$0xff]  ;;  %v397_v27 = vld [vmem:[%s929_s5 + $0x48] sm:$0xff]  ;;  %v396_v28 = vld [vmem:[%s929_s5 + $0x40] sm:$0xff] }
  0x33   : > { %371 = vmatpush.msra.mxu1 %v358_v9  ;;  %v395_v29 = vld [vmem:[%s929_s5 + $0x38] sm:$0xff]  ;;  %v394_v30 = vld [vmem:[%s929_s5 + $0x30] sm:$0xff]  ;;  %v393_v31 = vld [vmem:[%s929_s5 + $0x28] sm:$0xff] }
  0x34   : > { %409 = vmatpush.msra.mxu2 %v402_v22  ;;  %v392_v32 = vld [vmem:[%s929_s5 + $0x20] sm:$0xff]  ;;  %v391_v33 = vld [vmem:[%s929_s5 + $0x18] sm:$0xff]  ;;  %v390_v38 = vld [vmem:[%s929_s5 + $0x10] sm:$0xff] }
  0x35   : > { %372 = vmatpush.msra.mxu1 %v357_v10  ;;  %v570_v34 = vld [vmem:[%s926_s2] ss:$0 sm:$0xff]  ;;  %v389_v39 = vld [vmem:[%s929_s5 + $0x8] sm:$0xff] }
  0x36   : > { %410 = vmatpush.msra.mxu2 %v401_v23  ;;  %v388_v40 = vld [vmem:[%s929_s5] sm:$0xff] }
  0x37   : > { %373 = vmatpush.msra.mxu1 %v356_v11  ;;  %v571_v41 = vld [vmem:[%s928_s4] ss:$0 sm:$0xff] }
  0x38   : > { %411 = vmatpush.msra.mxu2 %v400_v24  ;;  %v572_v45 = vld [vmem:[%s930_s6] ss:$0 sm:$0xff] }
  0x39   : > { %374 = vmatpush.msra.mxu1 %v355_v12 }
  0x3a   : > { %412 = vmatpush.msra.mxu2 %v399_v25 }
  0x3b   : > { %375 = vmatpush.msra.mxu1 %v354_v13 }
  0x3c   : > { %413 = vmatpush.msra.mxu2 %v398_v26 }
  0x3d   : > { %376 = vmatpush.msra.mxu1 %v353_v14 }
  0x3e   : > { %414 = vmatpush.msra.mxu2 %v397_v27 }
  0x3f   : > { %377 = vmatpush.msra.mxu1 %v352_v15 }
  0x40   : > { %415 = vmatpush.msra.mxu2 %v396_v28 }
  0x41   : > { %378 = vmatpush.msra.mxu1 %v351_v16 }
  0x42   : > { %416 = vmatpush.msra.mxu2 %v395_v29 }
  0x43   : > { %379 = vmatpush.msra.mxu1 %v350_v17 }
  0x44   : > { %417 = vmatpush.msra.mxu2 %v394_v30 }
  0x45   : > { %380 = vmatpush.msra.mxu1 %v349_v18 }
  0x46   : > { %418 = vmatpush.msra.mxu2 %v393_v31 }
  0x47   : > { %381 = vmatpush.msra.mxu1 %v348_v19 }
  0x48   : > { %419 = vmatpush.msra.mxu2 %v392_v32 }
  0x49   : > { %382 = vmatpush.msra.mxu1 %v347_v20 }
  0x4a   : > { %420 = vmatpush.msra.mxu2 %v391_v33 }
  0x4c   : > { %421 = vmatpush.msra.mxu2 %v390_v38 }
  0x4e   : > { %422 = vmatpush.msra.mxu2 %v389_v39 }
  0x50   : > { %423 = vmatpush.msra.mxu2 %v388_v40 }
  0xae   : > { %v343_v35 = vpop.f32.mrf.mxu0 }
  0xaf   : > { %v344_v36 = vadd.f32 %v570_v34, %v343_v35 }
  0xb1   : > { %v346_v37 = vmax.f32 %v344_v36, 0.0 }
  0xb3   : > { %383 = vmatmul.f32.vlgmr.msra.gmra.mxu1 %v346_v37 }
 0x130   : > { %v384_v42 = vpop.f32.mrf.mxu1 }
 0x131   : > { %v385_v43 = vadd.f32 %v571_v41, %v384_v42 }
 0x133   : > { %v387_v44 = vmax.f32 %v385_v43, 0.0 }
 0x135   : > { %424 = vmatmul.f32.vlgmr.msra.gmra.mxu2 %v387_v44 }
 0x1b8   : > { %v425_v46 = vpop.f32.mrf.mxu2 }
 0x1b9   : > { %v426_v47 = vadd.f32 %v572_v45, %v425_v46 }
 0x1bb   : > { %429 = vst.msk [vmem:[%s312_s29] sm:$0xff] %vm428_vm1, %v426_v47 }
 0x1bc PF: > { %p18_p3 = scmp.ge.s32.totalorder %s752_s14, 4   ;;  %s935_s24 = smov %s663_s25 }
 0x1bd   : > { %s936_s25 = smov %s667_s26  ;;  %s937_s26 = smov %s762_s17 }
 0x1be   : > { %s938_s27 = smov %s752_s14  ;;  %20 = sbr.rel (!%p18_p3) target bundleno = 4 (0x4), region = 92 }
 0x1c3   :  { %449 = vsyncpa [#allocation3], 1 }
 0x1c4   :  { %451 = vsyncpa [#allocation3 + $0x1], 1 }
 0x1c5   :  { %452 = vsyncpa [#allocation5], 1 }

</bundles_post_ra>
